<compile_context>
chip_gen: v7x
topology: tpu7x:2x2x1
jax: 0.10.0
libtpu: 0.0.40
codegen_flags: <defaults>
</compile_context>

<pallas_src>
import jax
import jax.numpy as jnp
from jax import lax
from jax.experimental import pallas as pl
from jax.experimental.pallas import tpu as pltpu

EPS = 1e-5  # PyTorch BatchNorm1d default eps


def audio_encoder_kernel(
    x_ref,      # (Bb*Tp, 64)  bf16 -- time on sublanes, channels on lanes, batch segments stacked
    pm_ref,     # (Bb, R2)     bf16 -- segmented avg-pool matrix (1/L3 at valid rows, 0 at garbage)
    w1_ref,     # (192, 64)    bf16 -- conv1 im2col weights (BN folded)
    b1_ref,     # (1, 64)      f32
    w2_ref,     # (192, 128)   bf16 -- conv2 im2col weights (BN folded)
    b2_ref,     # (1, 128)     f32
    wp_ref,     # (128, 128)   bf16 -- projection weight (transposed)
    bp_ref,     # (1, 128)     f32
    o_ref,      # (1, Bb, 128) f32
    a1_scr,     # (R1, 64)     f32  VMEM scratch for the pooling strided reads
):
    n_rows, _ = x_ref.shape          # Bb * Tp
    R1 = n_rows - 2                  # conv1 rows over the flat sequence (incl. garbage rows)
    R1h = R1 // 2                    # pooled rows
    R2 = R1h - 2                     # conv2 rows

    x = x_ref[...]                                                                  # (Bb*Tp, 64) bf16

    # ---- Conv1d(64 -> 64, k=3) + folded BN + ReLU: one K=192 im2col matmul, M = Bb*Tp-2 ----
    # TODO(synk): on v5e (128-deep MXU) the 3-tap K=64 accumulate form (no lane concat)
    # may be preferable; K=192 single-pass kept for v6e/v7x.
    xi = jnp.concatenate([x[0:R1, :], x[1:1 + R1, :], x[2:2 + R1, :]], axis=1)       # (R1, 192)
    a1 = jnp.maximum(
        jnp.dot(xi, w1_ref[...], preferred_element_type=jnp.float32) + b1_ref[...],
        0.0)                                                                          # (R1, 64) f32
    a1_scr[...] = a1

    # ---- MaxPool1d(kernel_size=2, stride=2): direct even/odd row max (no sel matmuls) ----
    h = jnp.maximum(a1_scr[pl.ds(0, R1h, 2), :],
                    a1_scr[pl.ds(1, R1h, 2), :]).astype(jnp.bfloat16)                 # (R1h, 64)

    # ---- Conv1d(64 -> 128, k=3) + folded BN + ReLU ----
    hi = jnp.concatenate([h[0:R2, :], h[1:1 + R2, :], h[2:2 + R2, :]], axis=1)        # (R2, 192)
    a2 = jnp.maximum(
        jnp.dot(hi, w2_ref[...], preferred_element_type=jnp.float32) + b2_ref[...],
        0.0)                                                                          # (R2, 128) f32

    # ---- AdaptiveAvgPool1d(1): segmented mean (masks garbage rows, folds 1/L3 scale) ----
    feats = jnp.dot(pm_ref[...], a2.astype(jnp.bfloat16),
                    preferred_element_type=jnp.float32)                               # (Bb, 128)

    # ---- Linear(128 -> 128) + ReLU; Dropout(0.2) = identity in eval ----
    # TODO(synk): training-mode Dropout RNG / batch-stat BatchNorm not implemented.
    y = jnp.dot(feats.astype(jnp.bfloat16), wp_ref[...],
                preferred_element_type=jnp.float32) + bp_ref[...]
    o_ref[0] = jnp.maximum(y, 0.0)                                                    # (Bb, 128)


def audio_encoder(x, p, block_b=8):
    """x: (B, 64, T) float32. Returns (B, 128) float32 (eval-mode forward)."""
    B, Cin, T = x.shape
    assert Cin == 64
    assert T >= 8, "need T >= 8 so the second conv has a positive output length"

    # layer output lengths (from the ORIGINAL T; padding only adds masked garbage rows)
    L1 = T - 2
    L2 = L1 // 2
    L3 = L2 - 2

    # ---- fold BatchNorm (running stats) + conv bias into conv weights/biases ----
    s1 = p["g1"] * lax.rsqrt(p["v1"] + EPS)                       # (64,)
    w1f = p["w1"] * s1[:, None, None]                             # (64, 64, 3)
    b1f = (p["b1"] - p["m1"]) * s1 + p["be1"]                     # (64,)
    s2 = p["g2"] * lax.rsqrt(p["v2"] + EPS)                       # (128,)
    w2f = p["w2"] * s2[:, None, None]                             # (128, 64, 3)
    b2f = (p["b2"] - p["m2"]) * s2 + p["be2"]                     # (128,)

    # im2col weight layout: row index = k*64 + cin, columns = cout (bf16 for MXU)
    w1_im = jnp.transpose(w1f, (2, 1, 0)).reshape(192, 64).astype(jnp.bfloat16)
    w2_im = jnp.transpose(w2f, (2, 1, 0)).reshape(192, 128).astype(jnp.bfloat16)
    b1_row = b1f.reshape(1, 64).astype(jnp.float32)
    b2_row = b2f.reshape(1, 128).astype(jnp.float32)
    wpT = jnp.transpose(p["wp"]).astype(jnp.bfloat16)             # (128, 128)
    bp_row = p["bp"].reshape(1, 128).astype(jnp.float32)

    # ---- block sizing --------------------------------------------------------
    Tp = ((T + 15) // 16) * 16            # keep (Bb*Tp, 64) bf16 blocks (16,128)-tile aligned

    # bound the per-step working set (~1.8 KiB per padded time-step per sample:
    # double-buffered input + im2col buffers + f32 intermediates + pool scratch)
    # so it fits comfortably in v7x's 64 MiB (32 MiB scoped) VMEM.
    # TODO(synk): for very long clips (Tp*1792 > budget) add an inner time-tiled
    # pipeline (pltpu.emit_pipeline with a 2-row conv halo) instead of Bb=1.
    vmem_budget = 16 * 1024 * 1024
    bb_vmem_cap = max(1, vmem_budget // (Tp * 1792))
    # >= 2 grid steps whenever B >= 2 so both v7x TensorCores get work.
    Bb = max(1, min(block_b, pl.cdiv(B, 2), bb_vmem_cap))
    G = pl.cdiv(B, Bb)
    Bp = G * Bb

    Tp2 = Tp // 2
    R1 = Bb * Tp - 2
    R1h = R1 // 2
    R2 = R1h - 2

    # segmented avg-pool matrix: pm[b, b*Tp2 + l] = 1/L3 for l < L3, else 0.
    # Built once in the wrapper; constant index_map keeps it resident in VMEM.
    col = jnp.arange(R2, dtype=jnp.int32)[None, :]
    row = jnp.arange(Bb, dtype=jnp.int32)[:, None]
    local = col - row * Tp2
    pm = jnp.where((local >= 0) & (local < L3), 1.0 / L3, 0.0).astype(jnp.bfloat16)   # (Bb, R2)

    # time-major activations, padded and flattened so batch folds into the MXU M dim
    xt = jnp.transpose(x, (0, 2, 1)).astype(jnp.bfloat16)          # (B, T, 64)
    xt = jnp.pad(xt, ((0, Bp - B), (0, Tp - T), (0, 0)))           # (Bp, Tp, 64)
    x_flat = xt.reshape(Bp * Tp, 64)

    full = lambda shape: pl.BlockSpec(shape, lambda i: (0,) * len(shape))

    flops = 2 * G * (R1 * 192 * 64 + R2 * 192 * 128 + Bb * R2 * 128 + Bb * 128 * 128)
    bytes_accessed = (Bp * Tp * 64 * 2 + Bp * 128 * 4 + Bb * R2 * 2
                      + (192 * 64 + 192 * 128 + 128 * 128) * 2 + (64 + 128 + 128) * 4)

    out = pl.pallas_call(
        audio_encoder_kernel,
        grid=(G,),
        in_specs=[
            pl.BlockSpec((Bb * Tp, 64), lambda i: (i, 0)),        # x block (flat time)
            full((Bb, R2)),                                       # segmented avg-pool matrix
            full((192, 64)), full((1, 64)),                       # conv1 (folded)
            full((192, 128)), full((1, 128)),                     # conv2 (folded)
            full((128, 128)), full((1, 128)),                     # projection
        ],
        out_specs=pl.BlockSpec((1, Bb, 128), lambda i: (i, 0, 0)),  # lane-dense output
        out_shape=jax.ShapeDtypeStruct((G, Bb, 128), jnp.float32),
        scratch_shapes=[pltpu.VMEM((R1, 64), jnp.float32)],
        compiler_params=pltpu.CompilerParams(
            dimension_semantics=("parallel",),
            vmem_limit_bytes=32 * 1024 * 1024,
        ),
        cost_estimate=pl.CostEstimate(
            flops=flops, transcendentals=0, bytes_accessed=bytes_accessed),
    )(x_flat, pm, w1_im, b1_row, w2_im, b2_row, wpT, bp_row)

    return out.reshape(Bp, 128)[:B]                               # (B, 128)


def init_params(key):
    ks = jax.random.split(key, 16)
    p = {}
    p["w1"] = 0.05 * jax.random.normal(ks[0], (64, 64, 3), jnp.float32)
    p["b1"] = 0.05 * jax.random.normal(ks[1], (64,), jnp.float32)
    p["g1"] = 1.0 + 0.1 * jax.random.normal(ks[2], (64,), jnp.float32)
    p["be1"] = 0.1 * jax.random.normal(ks[3], (64,), jnp.float32)
    p["m1"] = 0.1 * jax.random.normal(ks[4], (64,), jnp.float32)
    p["v1"] = jax.random.uniform(ks[5], (64,), jnp.float32, 0.5, 1.5)
    p["w2"] = 0.05 * jax.random.normal(ks[6], (128, 64, 3), jnp.float32)
    p["b2"] = 0.05 * jax.random.normal(ks[7], (128,), jnp.float32)
    p["g2"] = 1.0 + 0.1 * jax.random.normal(ks[8], (128,), jnp.float32)
    p["be2"] = 0.1 * jax.random.normal(ks[9], (128,), jnp.float32)
    p["m2"] = 0.1 * jax.random.normal(ks[10], (128,), jnp.float32)
    p["v2"] = jax.random.uniform(ks[11], (128,), jnp.float32, 0.5, 1.5)
    p["wp"] = 0.05 * jax.random.normal(ks[12], (128, 128), jnp.float32)
    p["bp"] = 0.05 * jax.random.normal(ks[13], (128,), jnp.float32)
    return p


def reference(x, p):
    """Pure-JAX f32 reference of the eval-mode forward pass. x: (B, 64, T)."""
    def conv1d(xx, w, b):
        K = w.shape[2]
        L = xx.shape[-1] - K + 1
        out = jnp.zeros((xx.shape[0], w.shape[0], L), jnp.float32)
        for k in range(K):
            out = out + jnp.einsum("oi,bil->bol", w[:, :, k], xx[:, :, k:k + L])
        return out + b[None, :, None]

    def bn(xx, g, be, m, v):
        return (xx - m[None, :, None]) * lax.rsqrt(v[None, :, None] + EPS) \
            * g[None, :, None] + be[None, :, None]

    a = jnp.maximum(bn(conv1d(x, p["w1"], p["b1"]),
                       p["g1"], p["be1"], p["m1"], p["v1"]), 0.0)
    L2 = a.shape[-1] // 2
    a = a[:, :, :2 * L2].reshape(a.shape[0], a.shape[1], L2, 2).max(-1)
    a = jnp.maximum(bn(conv1d(a, p["w2"], p["b2"]),
                       p["g2"], p["be2"], p["m2"], p["v2"]), 0.0)
    feat = a.mean(-1)                                   # (B, 128)
    return jnp.maximum(feat @ p["wp"].T + p["bp"], 0.0)


if __name__ == "__main__":
    key = jax.random.PRNGKey(0)
    kx, kp = jax.random.split(key)

    B, T = 2, 16
    x4 = jax.random.normal(kx, (B, 1, 64, T), jnp.float32)  # PyTorch input shape
    params = init_params(kp)

    x = x4[:, 0]                              # x.squeeze(1) -> (B, 64, T)   (glue)
    out = audio_encoder(x, params)
    out = jax.block_until_ready(out)

    ref = jax.block_until_ready(reference(x, params))
    assert out.shape == (B, 128), out.shape
    # bf16 MXU operands with f32 accumulation -> compare against the f32 reference
    # with a slightly relaxed tolerance.
    assert jnp.allclose(out, ref, rtol=2e-2, atol=2e-2), \
        float(jnp.max(jnp.abs(out - ref)))

    print("KERNEL_OK")
</pallas_src>

<mosaic_0001>
module attributes {stable_mosaic.version = 11 : i64} {
  func.func @audio_encoder_kernel(%arg0: i32, %arg1: memref<16x64xbf16, #tpu.memory_space<vmem>>, %arg2: memref<1x5xbf16, #tpu.memory_space<vmem>>, %arg3: memref<192x64xbf16, #tpu.memory_space<vmem>>, %arg4: memref<1x64xf32, #tpu.memory_space<vmem>>, %arg5: memref<192x128xbf16, #tpu.memory_space<vmem>>, %arg6: memref<1x128xf32, #tpu.memory_space<vmem>>, %arg7: memref<128x128xbf16, #tpu.memory_space<vmem>>, %arg8: memref<1x128xf32, #tpu.memory_space<vmem>>, %arg9: memref<1x1x128xf32, #tpu.memory_space<vmem>>, %arg10: memref<14x64xf32, #tpu.memory_space<vmem>>) attributes {dimension_semantics = [#tpu.dimension_semantics<parallel>], iteration_bounds = array<i64: 2>, scalar_prefetch = 0 : i64, scratch_operands = 1 : i64, tpu.core_type = #tpu.core_type<tc>, window_params = [{transform_indices = @transform_0, window_bounds = array<i64: 16, 64>}, {pipeline_mode = #tpu.pipeline_mode<synchronous>, transform_indices = @transform_1, window_bounds = array<i64: 1, 5>}, {pipeline_mode = #tpu.pipeline_mode<synchronous>, transform_indices = @transform_2, window_bounds = array<i64: 192, 64>}, {pipeline_mode = #tpu.pipeline_mode<synchronous>, transform_indices = @transform_3, window_bounds = array<i64: 1, 64>}, {pipeline_mode = #tpu.pipeline_mode<synchronous>, transform_indices = @transform_4, window_bounds = array<i64: 192, 128>}, {pipeline_mode = #tpu.pipeline_mode<synchronous>, transform_indices = @transform_5, window_bounds = array<i64: 1, 128>}, {pipeline_mode = #tpu.pipeline_mode<synchronous>, transform_indices = @transform_6, window_bounds = array<i64: 128, 128>}, {pipeline_mode = #tpu.pipeline_mode<synchronous>, transform_indices = @transform_7, window_bounds = array<i64: 1, 128>}, {transform_indices = @transform_8, window_bounds = array<i64: 1, 1, 128>}]} {
    %c0 = arith.constant 0 : index
    %c0_0 = arith.constant 0 : index
    %0 = vector.load %arg1[%c0, %c0_0] : memref<16x64xbf16, #tpu.memory_space<vmem>>, vector<16x64xbf16>
    %1 = vector.extract_strided_slice %0 {offsets = [0, 0], sizes = [14, 64], strides = [1, 1]} : vector<16x64xbf16> to vector<14x64xbf16>
    %2 = vector.extract_strided_slice %0 {offsets = [1, 0], sizes = [14, 64], strides = [1, 1]} : vector<16x64xbf16> to vector<14x64xbf16>
    %3 = vector.extract_strided_slice %0 {offsets = [2, 0], sizes = [14, 64], strides = [1, 1]} : vector<16x64xbf16> to vector<14x64xbf16>
    %4 = tpu.concatenate %1, %2, %3 in 1 : vector<14x64xbf16>, vector<14x64xbf16>, vector<14x64xbf16> -> vector<14x192xbf16>
    %c0_1 = arith.constant 0 : index
    %c0_2 = arith.constant 0 : index
    %5 = vector.load %arg3[%c0_1, %c0_2] : memref<192x64xbf16, #tpu.memory_space<vmem>>, vector<192x64xbf16>
    %cst = arith.constant dense<0.000000e+00> : vector<14x64xf32>
    %6 = tpu.matmul %4, %5, %cst {dimension_numbers = #tpu.dot_dimension_numbers<[1], [0], [0], [1], [0, 0, 1, 1], [], []>} : vector<14x192xbf16>, vector<192x64xbf16>, vector<14x64xf32> -> vector<14x64xf32>
    %c0_3 = arith.constant 0 : index
    %c0_4 = arith.constant 0 : index
    %7 = vector.load %arg4[%c0_3, %c0_4] : memref<1x64xf32, #tpu.memory_space<vmem>>, vector<1x64xf32>
    %8 = vector.broadcast %7 : vector<1x64xf32> to vector<14x64xf32>
    %9 = arith.addf %6, %8 : vector<14x64xf32>
    %cst_5 = arith.constant 0.000000e+00 : f32
    %10 = vector.broadcast %cst_5 : f32 to vector<14x64xf32>
    %11 = arith.maximumf %9, %10 : vector<14x64xf32>
    %c0_6 = arith.constant 0 : index
    %c0_7 = arith.constant 0 : index
    %12 = vector.load %arg10[%c0_6, %c0_7] : memref<14x64xf32, #tpu.memory_space<vmem>>, vector<14x64xf32>
    tpu.vector_store %arg10[%c0_6, %c0_7], %11 {strides = array<i32>} : memref<14x64xf32, #tpu.memory_space<vmem>>, vector<14x64xf32>,
    %c0_8 = arith.constant 0 : index
    %c0_9 = arith.constant 0 : index
    %13 = tpu.strided_load %arg10[%c0_8, %c0_9] {strides = array<i32: 2, 1>} : memref<14x64xf32, #tpu.memory_space<vmem>>, vector<7x64xf32>
    %c1 = arith.constant 1 : index
    %c0_10 = arith.constant 0 : index
    %14 = tpu.strided_load %arg10[%c1, %c0_10] {strides = array<i32: 2, 1>} : memref<14x64xf32, #tpu.memory_space<vmem>>, vector<7x64xf32>
    %15 = arith.maximumf %13, %14 : vector<7x64xf32>
    %16 = arith.truncf %15 : vector<7x64xf32> to vector<7x64xbf16>
    %17 = vector.extract_strided_slice %16 {offsets = [0, 0], sizes = [5, 64], strides = [1, 1]} : vector<7x64xbf16> to vector<5x64xbf16>
    %18 = vector.extract_strided_slice %16 {offsets = [1, 0], sizes = [5, 64], strides = [1, 1]} : vector<7x64xbf16> to vector<5x64xbf16>
    %19 = vector.extract_strided_slice %16 {offsets = [2, 0], sizes = [5, 64], strides = [1, 1]} : vector<7x64xbf16> to vector<5x64xbf16>
    %20 = tpu.concatenate %17, %18, %19 in 1 : vector<5x64xbf16>, vector<5x64xbf16>, vector<5x64xbf16> -> vector<5x192xbf16>
    %c0_11 = arith.constant 0 : index
    %c0_12 = arith.constant 0 : index
    %21 = vector.load %arg5[%c0_11, %c0_12] : memref<192x128xbf16, #tpu.memory_space<vmem>>, vector<192x128xbf16>
    %cst_13 = arith.constant dense<0.000000e+00> : vector<5x128xf32>
    %22 = tpu.matmul %20, %21, %cst_13 {dimension_numbers = #tpu.dot_dimension_numbers<[1], [0], [0], [1], [0, 0, 1, 1], [], []>} : vector<5x192xbf16>, vector<192x128xbf16>, vector<5x128xf32> -> vector<5x128xf32>
    %c0_14 = arith.constant 0 : index
    %c0_15 = arith.constant 0 : index
    %23 = vector.load %arg6[%c0_14, %c0_15] : memref<1x128xf32, #tpu.memory_space<vmem>>, vector<1x128xf32>
    %24 = vector.broadcast %23 : vector<1x128xf32> to vector<5x128xf32>
    %25 = arith.addf %22, %24 : vector<5x128xf32>
    %cst_16 = arith.constant 0.000000e+00 : f32
    %26 = vector.broadcast %cst_16 : f32 to vector<5x128xf32>
    %27 = arith.maximumf %25, %26 : vector<5x128xf32>
    %c0_17 = arith.constant 0 : index
    %c0_18 = arith.constant 0 : index
    %28 = vector.load %arg2[%c0_17, %c0_18] : memref<1x5xbf16, #tpu.memory_space<vmem>>, vector<1x5xbf16>
    %29 = arith.truncf %27 : vector<5x128xf32> to vector<5x128xbf16>
    %cst_19 = arith.constant dense<0.000000e+00> : vector<1x128xf32>
    %30 = tpu.matmul %28, %29, %cst_19 {dimension_numbers = #tpu.dot_dimension_numbers<[1], [0], [0], [1], [0, 0, 1, 1], [], []>} : vector<1x5xbf16>, vector<5x128xbf16>, vector<1x128xf32> -> vector<1x128xf32>
    %31 = arith.truncf %30 : vector<1x128xf32> to vector<1x128xbf16>
    %c0_20 = arith.constant 0 : index
    %c0_21 = arith.constant 0 : index
    %32 = vector.load %arg7[%c0_20, %c0_21] : memref<128x128xbf16, #tpu.memory_space<vmem>>, vector<128x128xbf16>
    %cst_22 = arith.constant dense<0.000000e+00> : vector<1x128xf32>
    %33 = tpu.matmul %31, %32, %cst_22 {dimension_numbers = #tpu.dot_dimension_numbers<[1], [0], [0], [1], [0, 0, 1, 1], [], []>} : vector<1x128xbf16>, vector<128x128xbf16>, vector<1x128xf32> -> vector<1x128xf32>
    %c0_23 = arith.constant 0 : index
    %c0_24 = arith.constant 0 : index
    %34 = vector.load %arg8[%c0_23, %c0_24] : memref<1x128xf32, #tpu.memory_space<vmem>>, vector<1x128xf32>
    %35 = arith.addf %33, %34 : vector<1x128xf32>
    %cst_25 = arith.constant 0.000000e+00 : f32
    %36 = vector.broadcast %cst_25 : f32 to vector<1x128xf32>
    %37 = arith.maximumf %35, %36 : vector<1x128xf32>
    %c0_26 = arith.constant 0 : index
    %c0_27 = arith.constant 0 : index
    %c0_28 = arith.constant 0 : index
    %38 = vector.load %arg9[%c0_26, %c0_27, %c0_28] : memref<1x1x128xf32, #tpu.memory_space<vmem>>, vector<1x1x128xf32>
    %39 = vector.shape_cast %38 : vector<1x1x128xf32> to vector<1x128xf32>
    %40 = vector.shape_cast %37 : vector<1x128xf32> to vector<1x1x128xf32>
    tpu.vector_store %arg9[%c0_26, %c0_27, %c0_28], %40 {strides = array<i32>} : memref<1x1x128xf32, #tpu.memory_space<vmem>>, vector<1x1x128xf32>,
    return
  }
  func.func @transform_0(%arg0: i32) -> (i32, i32) {
    %c0_i32 = arith.constant 0 : i32
    %c0_i32_0 = arith.constant 0 : i32
    return %arg0, %c0_i32 : i32, i32
  }
  func.func @transform_1(%arg0: i32) -> (i32, i32) {
    %c0_i32 = arith.constant 0 : i32
    %c0_i32_0 = arith.constant 0 : i32
    %c0_i32_1 = arith.constant 0 : i32
    return %c0_i32, %c0_i32_0 : i32, i32
  }
  func.func @transform_2(%arg0: i32) -> (i32, i32) {
    %c0_i32 = arith.constant 0 : i32
    %c0_i32_0 = arith.constant 0 : i32
    %c0_i32_1 = arith.constant 0 : i32
    return %c0_i32, %c0_i32_0 : i32, i32
  }
  func.func @transform_3(%arg0: i32) -> (i32, i32) {
    %c0_i32 = arith.constant 0 : i32
    %c0_i32_0 = arith.constant 0 : i32
    %c0_i32_1 = arith.constant 0 : i32
    return %c0_i32, %c0_i32_0 : i32, i32
  }
  func.func @transform_4(%arg0: i32) -> (i32, i32) {
    %c0_i32 = arith.constant 0 : i32
    %c0_i32_0 = arith.constant 0 : i32
    %c0_i32_1 = arith.constant 0 : i32
    return %c0_i32, %c0_i32_0 : i32, i32
  }
  func.func @transform_5(%arg0: i32) -> (i32, i32) {
    %c0_i32 = arith.constant 0 : i32
    %c0_i32_0 = arith.constant 0 : i32
    %c0_i32_1 = arith.constant 0 : i32
    return %c0_i32, %c0_i32_0 : i32, i32
  }
  func.func @transform_6(%arg0: i32) -> (i32, i32) {
    %c0_i32 = arith.constant 0 : i32
    %c0_i32_0 = arith.constant 0 : i32
    %c0_i32_1 = arith.constant 0 : i32
    return %c0_i32, %c0_i32_0 : i32, i32
  }
  func.func @transform_7(%arg0: i32) -> (i32, i32) {
    %c0_i32 = arith.constant 0 : i32
    %c0_i32_0 = arith.constant 0 : i32
    %c0_i32_1 = arith.constant 0 : i32
    return %c0_i32, %c0_i32_0 : i32, i32
  }
  func.func @transform_8(%arg0: i32) -> (i32, i32, i32) {
    %c0_i32 = arith.constant 0 : i32
    %c0_i32_0 = arith.constant 0 : i32
    %c0_i32_1 = arith.constant 0 : i32
    return %arg0, %c0_i32, %c0_i32_0 : i32, i32, i32
  }
}

</mosaic_0001>

<bundles_post_ra>
// kernel: tpu_custom_call.1
= control target key start
LH: loop header
LB: loop body
LE: loop exit
PB: predicated region body
PF: predicated region fallthrough
CT: control target
= control target key end

     0   :  { %13 = vsyncpa [#allocation4], 0  ;;  %s1529_s0 = inlined_call_operand.hbm [shape: bf16[32,64], index: 0, kind: input, shape index: {}]   ;;  %s1530_s1 = inlined_call_operand.vmem [shape: bf16[1,5], index: 1, kind: input, shape index: {}]   ;;  %s1531_s2 = inlined_call_operand.vmem [shape: bf16[192,64], index: 2, kind: input, shape index: {}]   ;;  %s1532_s3 = inlined_call_operand.vmem [shape: f32[1,64], index: 3, kind: input, shape index: {}]   ;;  %s1533_s4 = inlined_call_operand.vmem [shape: bf16[192,128], index: 4, kind: input, shape index: {}]   ;;  %s1534_s5 = inlined_call_operand.vmem [shape: f32[1,128], index: 5, kind: input, shape index: {}]   ;;  %s1535_s6 = inlined_call_operand.vmem [shape: bf16[128,128], index: 6, kind: input, shape index: {}]   ;;  %s1536_s7 = inlined_call_operand.vmem [shape: f32[1,128], index: 7, kind: input, shape index: {}]   ;;  %s1537_s8 = inlined_call_operand.hbm [shape: f32[2,1,128], index: 8, kind: output, shape index: {}]  }
   0x1   :  { %15 = vsyncpa [#allocation4 + $0x1], 0 }
   0x2   :  { %16 = vsyncpa [#allocation5], 0 }
   0x3   :  { %18 = vsyncpa [#allocation5 + $0x1], 0  ;;  %s1229_s27 = smov 0   ;;  %s1231_s28 = smov 0  }
   0x4   :  { %s1233_s29 = smov 0   ;;  %s1235_s30 = smov 0  }
   0x5 LB: > { %s1250_s9 = sadd.s32 4294967295, %s1173_s30   ;;  %s904_s10 = sadd.s32 4294967294, %s1173_s30   ;;  %s1173_s30 = sphi %s1235_s30, %s1550_s30   ;;  %s1169_s29 = sphi %s1233_s29, %s1549_s29   ;;  %s1165_s28 = sphi %s1231_s28, %s1548_s28   ;;  %s1161_s27 = sphi %s1229_s27, %s1547_s27  }
   0x6   : > { %s1254_s11 = sadd.s32 1, %s1173_s30   ;;  %s31_s12 = sadd.s32 1, %s1169_s29 }
   0x7   : > { %s28_s13 = ssub.s32 %s1173_s30, %s1254_s11  ;;  %p38_p0 = scmp.ne.s32.totalorder %s1169_s29, %s1165_s28 }
   0x8   : > { %p29_p1 = scmp.eq.s32.totalorder %s28_s13, 0  ;;  %p39_p2 = scmp.eq.s32.totalorder %s1173_s30, 0 }
   0x9   : > { %p44_p3 = scmp.ne.s32.totalorder %s1165_s28, %s1161_s27  ;;  %p45_p4 = scmp.eq.s32.totalorder %s1250_s9, 0 }
   0xa   : > { %s1266_s14 = scalar_select %p29_p1, %s1169_s29, %s31_s12  }
   0xb   : > { %p1268_p5 = por %p39_p2, %p38_p0  ;;  %p1272_p6 = por %p45_p4, %p44_p3 }
   0xc   : > { %p215_p7 = scmp.eq.s32.totalorder %s1250_s9, 1  ;;  %p221_p8 = scmp.eq.s32.totalorder %s904_s10, 1 }
   0xd   : > { %p1003_p10 = scmp.lt.s32.totalorder %s1173_s30, 2  ;;  %s262_s19 = sand.u32 1, %s1169_s29  }
   0xe   : > { %p1279_p11 = por %p215_p7, %p38_p0  ;;  %p1283_p12 = por %p221_p8, %p44_p3 }
   0xf   : > { %s953_s20 = sshll.u32 %s1173_s30, 7  ;;  %s907_s21 = sshll.u32 %s262_s19, 3 }
  0x10   : > { %s1541_s17 = scalar_select %p1279_p11, 1, 0 }
  0x11   : > { %s1542_s18 = scalar_select %p1283_p12, 1, 0 }
  0x12   : > { %s1292_s24 = scalar_lea.hbm %s1529_s0, %s953_s20  ;;  %s266_s25 = scalar_lea.vmem [#allocation3], %s907_s21 }
  0x13   : > { %s273_s26 = sshll.u32 %s266_s25, 4  ;;  %p1296_p13 = pnand %p1003_p10, %p1268_p5  ;;  %s1300_s26 = int_to_ptr.vmem [resolvable:$true] %s273_s26 }
  0x14   : > { %s1302_s12 = scalar_lea.sflag [#allocation4], %s262_s19  ;;  %s1077_s13 = scalar_lea.hbm %s1292_s24, 128 }
  0x15   : > { %p1078_p0 = scmp.ne.s32.totalorder %s1292_s24, %s1077_s13  ;;  %p1079_p1 = pneg %p1296_p13 }
  0x16   : > { %s1082_s21 = scalar_lea.hbm %s1529_s0, 256  ;;  %p1083_p4 = scmp.lt.u32.totalorder %s1292_s24, %s1529_s0 }
  0x17   : > { %p1080_p2 = pnand %p1079_p1, %p1078_p0  ;;  %p1084_p5 = scmp.lt.u32.totalorder %s1082_s21, %s1077_s13 }
  0x18   : > { %p1086_p8 = scmp.lt.u32.totalorder %s1077_s13, %s1292_s24 }
  0x19   : > { %p1081_p3 = pneg %p1080_p2  ;;  %p1085_p7 = por %p1084_p5, %p1083_p4 }
  0x1b   : > { %p1087_p10 = por %p1086_p8, %p1085_p7 }
  0x1d   : > { %p1088_p9 = pnand %p1087_p10, %p1081_p3 }
  0x1f   : > { %1091 = shalt.err (!%p1088_p9)
}
  0x20   : > { %s1092_s19 = scalar_lea.vmem %s1300_s26, 128  ;;  %s1175_s25 = smov [#allocation3]  }
  0x21   : > { %p1093_p0 = scmp.ne.s32.totalorder %s1300_s26, %s1092_s19  ;;  %s1097_s20 = sshll.u32 %s1175_s25, 4  ;;  %s1098_s20 = int_to_ptr.vmem [resolvable:$false] %s1097_s20 }
  0x22   : > { %s1099_s15 = scalar_lea.vmem %s1098_s20, 256  ;;  %p1100_p11 = scmp.lt.s32.totalorder %s1300_s26, %s1098_s20 }
  0x23   : > { %p1095_p2 = pnand %p1093_p0, %p1079_p1  ;;  %p1101_p4 = scmp.lt.s32.totalorder %s1099_s15, %s1092_s19 }
  0x25   : > { %p1096_p12 = pneg %p1095_p2  ;;  %p1102_p5 = por %p1101_p4, %p1100_p11 }
  0x27   : > { %p1103_p7 = pnand %p1102_p5, %p1096_p12 }
  0x29   : > { %1106 = shalt.err (!%p1103_p7)
}
  0x2a   : > { %s1176_s13 = smov 64   ;;  %s1177_s21 = smov 4  }
  0x2b   : > { %998 = dma.hbm_to_vmem [thread:$0]  (!%p1296_p13), %s1292_s24, 128, %s1300_s26, %s1302_s12, %s1176_s13, %s1176_s13, %s1177_s21  }
  0x2c   : > { %p910_p9 = scmp.ge.s32.totalorder %s1173_s30, 1  ;;  %p281_p1 = scmp.lt.s32.totalorder %s1173_s30, 3 }
  0x2e   : > { %p282_p3 = pnand %p910_p9, %p281_p1 }
  0x2f   : > { %s1333_s22 = sand.u32 (!%p282_p3), 1, %s1165_s28  }
  0x30   : > { %285 = sbr.rel (%p282_p3) target bundleno = 1198 (0x4ae), region = 52  ;;  %s911_s23 = sshll.u32 (!%p282_p3), %s1333_s22, 3 }
  0x31   : > { %s288_s19 = scalar_lea.sflag (!%p282_p3), [#allocation4], %s1333_s22  ;;  %s291_s25 = scalar_lea.vmem (!%p282_p3), [#allocation3], %s911_s23 }
  0x37   : > { %1152 = dma.done.wait (%p1272_p6), %s288_s19, 128  }
  0x38   : > { %1154 = vsyncadd (%p1272_p6), %s288_s19, 4294967168  ;;  %v1178_v0 = vmov 0   ;;  %v1044_v1 = vld [vmem:[%s291_s25] sm:$0xff]   ;;  %v1045_v2 = vld [vmem:[%s1531_s2] sm:$0xff]   ;;  %vm342_vm0 = vcmask 523264   ;;  %s1179_s15 = smov 64  }
  0x39   : > { %452 = vmatprep.subr.bf16.mxu0 %v1178_v0  ;;  %623 = vmatprep.subr.bf16.mxu1 %v1178_v0  ;;  %v333_v3 = vshrl.u32 %v1044_v1, 16  ;;  %v335_v4 = vshll.u32 %v1044_v1, 16  ;;  %v1046_v5 = vld [vmem:[%s1531_s2 + $0x8] sm:$0xff]   ;;  %v341_v6 = vrot.slane %v1044_v1, 1  ;;  %v1047_v9 = vld [vmem:[%s1531_s2 + $0x10] sm:$0xff]   ;;  %v1048_v10 = vld [vmem:[%s1531_s2 + $0x18] sm:$0xff]  }
  0x3a   : > { %453 = vmatpush1.bf16.msra.mxu0 %v1045_v2  ;;  %v1049_v11 = vld [vmem:[%s1531_s2 + $0x20] sm:$0xff]   ;;  %v1050_v12 = vld [vmem:[%s1531_s2 + $0x28] sm:$0xff]   ;;  %v1051_v13 = vld [vmem:[%s1531_s2 + $0x30] sm:$0xff]   ;;  %vm496_vm1 = vcmask 521216   ;;  %v1180_v53 = vmov 0.0   ;;  %vm1181_vm2 = vmmov 0  }
  0x3b   : > { %v337_v7 = vrot.slane %v335_v4, 1  ;;  %454 = vmatprep.subr.bf16.mxu0 %v1178_v0  ;;  %926 = vmatprep.mubr.msk.bf16.mxu0 %vm342_vm0, %v341_v6  ;;  %v1052_v14 = vld [vmem:[%s1531_s2 + $0x38] sm:$0xff]   ;;  %v1053_v15 = vld [vmem:[%s1531_s2 + $0x40] sm:$0xff]   ;;  %v1054_v16 = vld [vmem:[%s1531_s2 + $0x48] sm:$0xff]   ;;  %vm670_vm3 = vcmask 1041408   ;;  %vm671_vm4 = vcmask 1042432  }
  0x3c   : > { %v1055_v17 = vld [vmem:[%s1531_s2 + $0x50] sm:$0xff]   ;;  %v1056_v18 = vld [vmem:[%s1531_s2 + $0x58] sm:$0xff]   ;;  %v1057_v21 = vld [vmem:[%s1533_s4] sm:$0xff]   ;;  %vm666_vm5 = vcmask 39936   ;;  %s950_s16 = sshll.u32 %s1250_s9, 4  ;;  %s322_s20 = scalar_lea.vmem [#allocation6], %s1333_s22 }
  0x3d   : > { %v338_v8 = vor.u32 %v337_v7, %v333_v3  ;;  %624 = vmatpush1.bf16.msra.mxu1 %v1057_v21  ;;  %v1058_v22 = vld [vmem:[%s1533_s4 + $0x8] sm:$0xff]   ;;  %v1059_v23 = vld [vmem:[%s1533_s4 + $0x10] sm:$0xff]   ;;  %v1060_v24 = vld [vmem:[%s1533_s4 + $0x18] sm:$0xff]   ;;  %s838_s13 = sshll.u32 %s322_s20, 4  ;;  %s1485_s19 = scalar_lea.hbm %s1537_s8, %s950_s16  ;;  %s1487_s13 = int_to_ptr.vmem [resolvable:$true] %s838_s13 }
  0x3e   : > { %455 = vmatpush1.bf16.msra.mxu0 %v1046_v5  ;;  %625 = vmatprep.subr.bf16.mxu1 %v1178_v0  ;;  %v1061_v25 = vld [vmem:[%s1533_s4 + $0x20] sm:$0xff]   ;;  %v1062_v26 = vld [vmem:[%s1533_s4 + $0x28] sm:$0xff]   ;;  %v1063_v27 = vld [vmem:[%s1533_s4 + $0x30] sm:$0xff]   ;;  %s1107_s9 = scalar_lea.vmem %s1487_s13, 16  ;;  %p1544_p11 = scmp.ne.s32.totalorder %s1541_s17, 0 }
  0x3f   : > { %339 = vrot.lane.b32.xlu0 %v338_v8, %s1179_s15  ;;  %456 = vmatprep.subr.bf16.mxu0 %v1178_v0  ;;  %v1064_v28 = vld [vmem:[%s1533_s4 + $0x38] sm:$0xff]   ;;  %v1065_v29 = vld [vmem:[%s1533_s4 + $0x40] sm:$0xff]   ;;  %v1066_v30 = vld [vmem:[%s1533_s4 + $0x48] sm:$0xff]   ;;  %p1108_p6 = scmp.ne.s32.totalorder %s1487_s13, %s1107_s9  ;;  %s1183_s25 = smov [#allocation6]  }
  0x40   : > { %v1067_v31 = vld [vmem:[%s1533_s4 + $0x50] sm:$0xff]   ;;  %v1068_v32 = vld [vmem:[%s1533_s4 + $0x58] sm:$0xff]   ;;  %v913_v33 = vld [vmem:[%s1532_s3] ss:$0 sm:$0xff]  ;;  %s1111_s24 = sshll.u32 %s1183_s25, 4  ;;  %s1112_s24 = int_to_ptr.vmem [resolvable:$false] %s1111_s24 }
  0x41   : > { %626 = vmatpush1.bf16.msra.mxu1 %v1058_v22  ;;  %v1069_v54 = vld [vmem:[%s1535_s6] sm:$0xff]   ;;  %v1070_v55 = vld [vmem:[%s1535_s6 + $0x8] sm:$0xff]   ;;  %v1071_v56 = vld [vmem:[%s1535_s6 + $0x10] sm:$0xff]   ;;  %p1109_p12 = pnand %p1108_p6, %p1544_p11  ;;  %s1113_s26 = scalar_lea.vmem %s1112_s24, 32 }
  0x42   : > { %457 = vmatpush1.bf16.msra.mxu0 %v1047_v9  ;;  %627 = vmatprep.subr.bf16.mxu1 %v1178_v0  ;;  %v1072_v57 = vld [vmem:[%s1535_s6 + $0x18] sm:$0xff]   ;;  %v1073_v58 = vld [vmem:[%s1535_s6 + $0x20] sm:$0xff]   ;;  %v1074_v59 = vld [vmem:[%s1535_s6 + $0x28] sm:$0xff]   ;;  %p1114_p8 = scmp.lt.s32.totalorder %s1487_s13, %s1112_s24  ;;  %p1115_p10 = scmp.lt.s32.totalorder %s1113_s26, %s1107_s9 }
  0x43   : > { %458 = vmatprep.subr.bf16.mxu0 %v1178_v0  ;;  %v1075_v60 = vld [vmem:[%s1535_s6 + $0x30] sm:$0xff]   ;;  %v927_v61 = vld [vmem:[%s1534_s5] ss:$0 sm:$0xff]  ;;  %p1110_p13 = pneg %p1109_p12 }
  0x44   : > { %v664_v9 = vld [vmem:[%s1530_s1] sm:$0x1]  ;;  %p1116_p0 = por %p1115_p10, %p1114_p8 }
  0x45   : > { %628 = vmatpush1.bf16.msra.mxu1 %v1059_v23 }
  0x46   : > { %459 = vmatpush1.bf16.msra.mxu0 %v1048_v10  ;;  %629 = vmatprep.subr.bf16.mxu1 %v1178_v0  ;;  %v1076_v10 = vld [vmem:[%s1535_s6 + $0x38] sm:$0xff]   ;;  %p1117_p2 = pnand %p1116_p0, %p1110_p13 }
  0x47   : > { %460 = vmatprep.subr.bf16.mxu0 %v1178_v0 }
  0x49   : > { %630 = vmatpush1.bf16.msra.mxu1 %v1060_v24 }
  0x4a   : > { %461 = vmatpush1.bf16.msra.mxu0 %v1049_v11  ;;  %631 = vmatprep.subr.bf16.mxu1 %v1178_v0 }
  0x4b   : > { %462 = vmatprep.subr.bf16.mxu0 %v1178_v0 }
  0x4d   : > { %632 = vmatpush1.bf16.msra.mxu1 %v1061_v25 }
  0x4e   : > { %463 = vmatpush1.bf16.msra.mxu0 %v1050_v12  ;;  %633 = vmatprep.subr.bf16.mxu1 %v1178_v0 }
  0x4f   : > { %464 = vmatprep.subr.bf16.mxu0 %v1178_v0 }
  0x51   : > { %634 = vmatpush1.bf16.msra.mxu1 %v1062_v26 }
  0x52   : > { %465 = vmatpush1.bf16.msra.mxu0 %v1051_v13  ;;  %635 = vmatprep.subr.bf16.mxu1 %v1178_v0 }
  0x53   : > { %466 = vmatprep.subr.bf16.mxu0 %v1178_v0 }
  0x55   : > { %636 = vmatpush1.bf16.msra.mxu1 %v1063_v27 }
  0x56   : > { %467 = vmatpush1.bf16.msra.mxu0 %v1052_v14  ;;  %637 = vmatprep.subr.bf16.mxu1 %v1178_v0 }
  0x57   : > { %468 = vmatprep.subr.bf16.mxu0 %v1178_v0 }
  0x59   : > { %638 = vmatpush1.bf16.msra.mxu1 %v1064_v28 }
  0x5a   : > { %469 = vmatpush1.bf16.msra.mxu0 %v1053_v15  ;;  %639 = vmatprep.subr.bf16.mxu1 %v1178_v0 }
  0x5b   : > { %470 = vmatprep.subr.bf16.mxu0 %v1178_v0 }
  0x5d   : > { %640 = vmatpush1.bf16.msra.mxu1 %v1065_v29 }
  0x5e   : > { %471 = vmatpush1.bf16.msra.mxu0 %v1054_v16  ;;  %641 = vmatprep.subr.bf16.mxu1 %v1178_v0  ;;  %v734_v16 = vld [vmem:[%s1536_s7] sm:$0x1] }
  0x5f   : > { %472 = vmatprep.subr.bf16.mxu0 %v1178_v0 }
  0x61   : > { %642 = vmatpush1.bf16.msra.mxu1 %v1066_v30 }
  0x62   : > { %473 = vmatpush1.bf16.msra.mxu0 %v1055_v17  ;;  %643 = vmatprep.subr.bf16.mxu1 %v1178_v0 }
  0x63   : > { %474 = vmatprep.subr.bf16.mxu0 %v1178_v0 }
  0x65   : > { %644 = vmatpush1.bf16.msra.mxu1 %v1067_v31 }
  0x66   : > { %475 = vmatpush1.bf16.msra.mxu0 %v1056_v18  ;;  %645 = vmatprep.subr.bf16.mxu1 %v1178_v0  ;;  %v1182_v0 = vmov 65535  }
  0x67   : > { %965 = vmatprep.subr.bf16.mxu0 %v1180_v53 }
  0x69   : > { %646 = vmatpush1.bf16.msra.mxu1 %v1068_v32 }
  0x6a   : > { %971 = vmatprep.subr.bf16.mxu1 %v1180_v53 }
  0xb1   : > { %v340_v19 = vpop.permute.xlu0 %339 }
  0xb2   : > { %v344_v20 = vsel %vm342_vm0, %v1044_v1, %v340_v19  ;;  %v672_v1 = vsel %vm670_vm3, 4294967295, %v1182_v0 }
  0xb3   : > { %485 = vmatmul.mubr.bf16.vlgmr.msra.gmra.mrb[0].mxu0 %v344_v20  ;;  %v673_v6 = vsel %vm671_vm4, %v672_v1, 0 }
  0xb4   : > { %967 = vmatprep.mubr.msk.bf16.mxu0 %vm1181_vm2, %v1180_v53 }
 0x186   : > { %v486_v34 = vpop.f32.mrb[0].mxu0 }
 0x187   : > { %v487_v35 = vadd.f32 %v913_v33, %v486_v34  ;;  %v488_v36 = vpop.f32.mrb[1].mxu0 }
 0x188   : > { %v489_v37 = vpop.f32.mrb[2].mxu0 }
 0x189   : > { %v493_v38 = vmax.f32 %v487_v35, 0.0  ;;  %v490_v39 = vadd.f32 %v913_v33, %v489_v37  ;;  %v491_v40 = vpop.f32.mrb[3].mxu0 }
 0x18b   : > { %495 = vst.msk [vmem:[#allocation2] sm:$0xff] %vm342_vm0, %v493_v38  ;;  %v494_v41 = vmax.f32 %v490_v39, 0.0 }
 0x18d   : > { %497 = vst.msk [vmem:[#allocation2 + $0x8] sm:$0x3f] %vm496_vm1, %v494_v41 }
 0x194   : > { %v498_v42 = vld [vmem:[#allocation2] ss:$2 sm:$0x7f]  ;;  %v500_v43 = vld [vmem:[#allocation2 + $0x1] ss:$2 sm:$0x7f] }
 0x195   : > { %v501_v44 = vmax.f32 %v498_v42, %v500_v43 }
 0x197   : > { %v502_v45 = vpack.c.bf16 %v501_v44, %v501_v44 }
 0x199   : > { %v513_v46 = vrot.slane %v502_v45, 1  ;;  %v506_v47 = vshll.u32 %v502_v45, 16  ;;  %v504_v48 = vshrl.u32 %v502_v45, 16 }
 0x19b   : > { %940 = vmatprep.mubr.msk.bf16.mxu1 %vm342_vm0, %v513_v46  ;;  %v508_v49 = vrot.slane %v506_v47, 1 }
 0x19d   : > { %v509_v50 = vor.u32 %v508_v49, %v504_v48 }
 0x19f   : > { %510 = vrot.lane.b32.xlu0 %v509_v50, %s1179_s15  ;;  %s826_s15 = scalar_lea.sflag [#allocation5], %s1333_s22 }
 0x211   : > { %v511_v51 = vpop.permute.xlu0 %510 }
 0x212   : > { %v515_v52 = vsel %vm342_vm0, %v502_v45, %v511_v51 }
 0x213   : > { %656 = vmatmul.mubr.bf16.vlgmr.msra.gmra.mrb[0].mxu1 %v515_v52 }
 0x214   : > { %987 = vmatprep.mubr.msk.bf16.mxu1 %vm1181_vm2, %v1180_v53  ;;  %972 = vmatpush3.bf16.msra.mxu1 %v1069_v54 }
 0x215   : > { %973 = vmatprep.subr.bf16.mxu1 %v1180_v53 }
 0x218   : > { %974 = vmatpush3.bf16.msra.mxu1 %v1070_v55 }
 0x219   : > { %975 = vmatprep.subr.bf16.mxu1 %v1180_v53 }
 0x21c   : > { %976 = vmatpush3.bf16.msra.mxu1 %v1071_v56 }
 0x21d   : > { %977 = vmatprep.subr.bf16.mxu1 %v1180_v53 }
 0x220   : > { %978 = vmatpush3.bf16.msra.mxu1 %v1072_v57 }
 0x221   : > { %979 = vmatprep.subr.bf16.mxu1 %v1180_v53 }
 0x224   : > { %980 = vmatpush3.bf16.msra.mxu1 %v1073_v58 }
 0x225   : > { %981 = vmatprep.subr.bf16.mxu1 %v1180_v53 }
 0x228   : > { %982 = vmatpush3.bf16.msra.mxu1 %v1074_v59 }
 0x229   : > { %983 = vmatprep.subr.bf16.mxu1 %v1180_v53 }
 0x22c   : > { %984 = vmatpush3.bf16.msra.mxu1 %v1075_v60 }
 0x22d   : > { %985 = vmatprep.subr.bf16.mxu1 %v1180_v53 }
 0x230   : > { %986 = vmatpush3.bf16.msra.mxu1 %v1076_v10 }
 0x2e6   : > { %v657_v62 = vpop.f32.mrb[0].mxu1 }
 0x2e7   : > { %v658_v63 = vadd.f32 %v927_v61, %v657_v62  ;;  %v659_v2 = vpop.f32.mrb[1].mxu1 }
 0x2e8   : > { %v660_v3 = vpop.f32.mrb[2].mxu1 }
 0x2e9   : > { %v663_v4 = vmax.f32 %v658_v63, 0.0  ;;  %v661_v5 = vpop.f32.mrb[3].mxu1 }
 0x2eb   : > { %v665_v7 = vpack.c.bf16 %v663_v4, %v663_v4 }
 0x2ed   : > { %v675_v8 = vand.u32 %v673_v6, %v665_v7 }
 0x2ef   : > { %966 = vmatpush3.bf16.msra.mxu0 %v675_v8 }
 0x2f2   : > { %968 = vmatmul.mubr.msk.bf16.vlgmr.msra.gmra.mrb[4].mxu0 %vm666_vm5, %v664_v9 }
 0x3c5   : > { %v711_v11 = vpop.f32.mrb[4].mxu0 }
 0x3c6   : > { %v717_v12 = vpack.c.bf16 %v711_v11, %v711_v11  ;;  %v969_v13 = vpop.f32.mrb[5].mxu0 }
 0x3c7   : > { %v714_v14 = vpop.f32.mrb[6].mxu0 }
 0x3c8   : > { %v970_v15 = vpop.f32.mrb[7].mxu0  ;;  %988 = vmatmul.mubr.bf16.vlgmr.msra.gmra.mrb[4].mxu1 %v717_v12 }
 0x49b   : > { %v817_v17 = vpop.f32.mrb[4].mxu1 }
 0x49c   : > { %v818_v18 = vadd.f32 %v817_v17, %v734_v16  ;;  %v989_v19 = vpop.f32.mrb[5].mxu1 }
 0x49d   : > { %v820_v20 = vpop.f32.mrb[6].mxu1 }
 0x49e   : > { %v823_v21 = vmax.f32 %v818_v18, 0.0  ;;  %v990_v22 = vpop.f32.mrb[7].mxu1 }
 0x4a0   : > { %824 = vst [vmem:[%s322_s20] sm:$0x1] %v823_v21 }
 0x4a1   : > { %1120 = shalt.err (!%p1117_p2)
}
 0x4a2   : > { %s1121_s22 = scalar_lea.hbm %s1485_s19, 16  ;;  %s1125_s16 = scalar_lea.hbm %s1537_s8, 32 }
 0x4a3   : > { %p1122_p4 = scmp.ne.s32.totalorder %s1485_s19, %s1121_s22  ;;  %p1126_p9 = scmp.lt.u32.totalorder %s1485_s19, %s1537_s8 }
 0x4a4   : > { %p1127_p1 = scmp.lt.u32.totalorder %s1125_s16, %s1121_s22  ;;  %p1129_p6 = scmp.lt.u32.totalorder %s1121_s22, %s1485_s19 }
 0x4a5   : > { %p1123_p5 = pnand %p1122_p4, %p1544_p11 }
 0x4a6   : > { %p1128_p3 = por %p1127_p1, %p1126_p9 }
 0x4a7   : > { %p1124_p7 = pneg %p1123_p5 }
 0x4a8   : > { %p1130_p12 = por %p1129_p6, %p1128_p3 }
 0x4aa   : > { %p1131_p13 = pnand %p1130_p12, %p1124_p7 }
 0x4ac   : > { %1134 = shalt.err (!%p1131_p13)
}
 0x4ad   : > { %993 = dma.vmem_to_hbm [thread:$0]  (%p1544_p11), %s1487_s13, 16, %s1485_s19, %s826_s15  }
 0x4ae PF: > { %s850_s23 = sand.u32 1, %s1161_s27   ;;  %p1545_p8 = scmp.ne.s32.totalorder %s1542_s18, 0 }
 0x4af   : > { %p1546_p10 = scmp.ge.s32.totalorder %s1173_s30, 2  ;;  %s851_s9 = scalar_lea.sflag [#allocation5], %s850_s23 }
 0x4b1   : > { %p1000_p0 = pnand %p1546_p10, %p1545_p8 }
 0x4b3   : > { %1156 = dma.done.wait (!%p1000_p0), %s851_s9, 16  }
 0x4b4   : > { %1158 = vsyncadd (!%p1000_p0), %s851_s9, 4294967280  ;;  %p21_p2 = scmp.ge.s32.totalorder %s1254_s11, 4   ;;  %s1547_s27 = smov %s1165_s28 }
 0x4b5   : > { %s1548_s28 = smov %s1169_s29  ;;  %s1549_s29 = smov %s1266_s14 }
 0x4b6   : > { %s1550_s30 = smov %s1254_s11  ;;  %23 = sbr.rel (!%p21_p2) target bundleno = 5 (0x5), region = 98 }
 0x4bd   :  { %855 = vsyncpa [#allocation4], 1 }
 0x4be   :  { %857 = vsyncpa [#allocation4 + $0x1], 1 }
 0x4bf   :  { %858 = vsyncpa [#allocation5], 1 }
 0x4c0   :  { %860 = vsyncpa [#allocation5 + $0x1], 1 }

</bundles_post_ra>
